<compile_context>
chip_gen: v5e
topology: v5e:2x2
jax: 0.10.0
libtpu: 0.0.40
codegen_flags: <defaults>
</compile_context>

<pallas_src>
import jax
import jax.numpy as jnp
from jax.experimental import pallas as pl
from jax.experimental.pallas import tpu as pltpu


def _linear_softmax_kernel(w_ref, xT_ref, o_ref):
    # w_ref : (F,)   SMEM  — weight row of nn.Linear(4, 1), read as scalars.
    # xT_ref: (F, N) VMEM  — input transposed so the batch axis sits on lanes.
    # o_ref : (1, N) VMEM  — lane-dense softmax output row.
    f = xT_ref.shape[0]
    xT = xT_ref[...].astype(jnp.float32)            # (F, N)

    # Linear1 (out_features=1): F static sublane rows, each scaled by a scalar
    # weight from SMEM and accumulated — pure VPU, no cross-lane reduce over F.
    # (Bias omitted: softmax over dim=0 cancels a per-column constant shift.)
    y = w_ref[0].astype(jnp.float32) * xT[0:1, :]   # (1, N)
    for i in range(1, f):                           # static unroll (F = 4)
        y = y + w_ref[i].astype(jnp.float32) * xT[i:i + 1, :]

    # Numerically stable softmax over the batch axis (lanes).
    m = jnp.max(y, axis=-1, keepdims=True)          # (1, 1)
    e = jnp.exp(y - m)                              # (1, N)
    s = jnp.sum(e, axis=-1, keepdims=True)          # (1, 1)
    o_ref[...] = (e / s).astype(o_ref.dtype)        # exact normalization


def thi_model_forward(x, w, b):
    """x: (N, F) float32, w: (1, F), b: (1,). Returns softmax(x @ w.T + b, dim=0): (N, 1).

    The bias is accepted for API parity with nn.Linear but softmax along dim=0
    is invariant to a per-column constant shift, so it never reaches the kernel.
    """
    del b  # shift-invariance of softmax over dim=0 (exact, since max is subtracted)
    n, f = x.shape

    x_t = x.T                 # (F, N): batch on lanes inside the kernel
    w_flat = w.reshape(f)     # (F,) scalars for SMEM

    out_row = pl.pallas_call(
        _linear_softmax_kernel,
        out_shape=jax.ShapeDtypeStruct((1, n), x.dtype),
        in_specs=[
            pl.BlockSpec(memory_space=pltpu.MemorySpace.SMEM),  # w: tiny, no VMEM tile
            pl.BlockSpec((f, n), lambda: (0, 0)),               # x^T: full block
        ],
        out_specs=pl.BlockSpec((1, n), lambda: (0, 0)),          # lane-dense output
    )(w_flat, x_t)

    return out_row.reshape(n, 1)


if __name__ == "__main__":
    key = jax.random.PRNGKey(0)
    kx, kw, kb = jax.random.split(key, 3)

    # Small shapes consistent with the module: batch=8, in_features=4.
    N, F = 8, 4
    x = jax.random.normal(kx, (N, F), dtype=jnp.float32)

    # nn.Linear(4, 1)-shaped params with PyTorch-default-like uniform init.
    bound = 1.0 / jnp.sqrt(jnp.float32(F))
    w = jax.random.uniform(kw, (1, F), dtype=jnp.float32, minval=-bound, maxval=bound)
    b = jax.random.uniform(kb, (1,), dtype=jnp.float32, minval=-bound, maxval=bound)

    out = thi_model_forward(x, w, b)
    jax.block_until_ready(out)

    # Pure-JAX reference (including the bias, exactly as the PyTorch module does).
    ref = jax.nn.softmax(x @ w.T + b, axis=0)
    assert out.shape == (N, 1)
    assert jnp.allclose(out, ref, atol=1e-5, rtol=1e-5)

    print("KERNEL_OK")
</pallas_src>

<mosaic_0001>
module attributes {stable_mosaic.version = 11 : i64} {
  func.func @_linear_softmax_kernel(%arg0: memref<4xf32, #tpu.memory_space<smem>>, %arg1: memref<4x8xf32, #tpu.memory_space<vmem>>, %arg2: memref<1x8xf32, #tpu.memory_space<vmem>>) attributes {dimension_semantics = [], scalar_prefetch = 0 : i64, scratch_operands = 0 : i64, tpu.core_type = #tpu.core_type<tc>} {
    %c0 = arith.constant 0 : index
    %c0_0 = arith.constant 0 : index
    %0 = vector.load %arg1[%c0, %c0_0] : memref<4x8xf32, #tpu.memory_space<vmem>>, vector<4x8xf32>
    %c0_1 = arith.constant 0 : index
    %1 = memref.load %arg0[%c0_1] : memref<4xf32, #tpu.memory_space<smem>>
    %2 = vector.extract_strided_slice %0 {offsets = [0, 0], sizes = [1, 8], strides = [1, 1]} : vector<4x8xf32> to vector<1x8xf32>
    %3 = vector.broadcast %1 : f32 to vector<1x8xf32>
    %4 = arith.mulf %3, %2 : vector<1x8xf32>
    %c1 = arith.constant 1 : index
    %5 = memref.load %arg0[%c1] : memref<4xf32, #tpu.memory_space<smem>>
    %6 = vector.extract_strided_slice %0 {offsets = [1, 0], sizes = [1, 8], strides = [1, 1]} : vector<4x8xf32> to vector<1x8xf32>
    %7 = vector.broadcast %5 : f32 to vector<1x8xf32>
    %8 = arith.mulf %7, %6 : vector<1x8xf32>
    %9 = arith.addf %4, %8 : vector<1x8xf32>
    %c2 = arith.constant 2 : index
    %10 = memref.load %arg0[%c2] : memref<4xf32, #tpu.memory_space<smem>>
    %11 = vector.extract_strided_slice %0 {offsets = [2, 0], sizes = [1, 8], strides = [1, 1]} : vector<4x8xf32> to vector<1x8xf32>
    %12 = vector.broadcast %10 : f32 to vector<1x8xf32>
    %13 = arith.mulf %12, %11 : vector<1x8xf32>
    %14 = arith.addf %9, %13 : vector<1x8xf32>
    %c3 = arith.constant 3 : index
    %15 = memref.load %arg0[%c3] : memref<4xf32, #tpu.memory_space<smem>>
    %16 = vector.extract_strided_slice %0 {offsets = [3, 0], sizes = [1, 8], strides = [1, 1]} : vector<4x8xf32> to vector<1x8xf32>
    %17 = vector.broadcast %15 : f32 to vector<1x8xf32>
    %18 = arith.mulf %17, %16 : vector<1x8xf32>
    %19 = arith.addf %14, %18 : vector<1x8xf32>
    %cst = arith.constant dense<0xFF800000> : vector<1xf32>
    %20 = vector.multi_reduction <maximumf>, %19, %cst [1] : vector<1x8xf32> to vector<1xf32>
    %21 = vector.shape_cast %20 : vector<1xf32> to vector<1x1xf32>
    %22 = vector.broadcast %21 : vector<1x1xf32> to vector<1x8xf32>
    %23 = arith.subf %19, %22 : vector<1x8xf32>
    %24 = math.exp %23 : vector<1x8xf32>
    %cst_2 = arith.constant dense<0.000000e+00> : vector<1xf32>
    %25 = vector.multi_reduction <add>, %24, %cst_2 [1] : vector<1x8xf32> to vector<1xf32>
    %26 = vector.shape_cast %25 : vector<1xf32> to vector<1x1xf32>
    %27 = vector.broadcast %26 : vector<1x1xf32> to vector<1x8xf32>
    %28 = arith.divf %24, %27 : vector<1x8xf32>
    %c0_3 = arith.constant 0 : index
    %c0_4 = arith.constant 0 : index
    %29 = vector.load %arg2[%c0_3, %c0_4] : memref<1x8xf32, #tpu.memory_space<vmem>>, vector<1x8xf32>
    tpu.vector_store %arg2[%c0_3, %c0_4], %28 {strides = array<i32>} : memref<1x8xf32, #tpu.memory_space<vmem>>, vector<1x8xf32>,
    return
  }
}

</mosaic_0001>

<bundles_post_ra>
// kernel: tpu_custom_call.1
= control target key start
LH: loop header
LB: loop body
LE: loop exit
PB: predicated region body
PF: predicated region fallthrough
CT: control target
= control target key end

     0   :  { %7 = vsyncpa [#allocation5], 0  ;;  %s214_s0 = inlined_call_operand.hbm [shape: f32[4], index: 0, kind: input, shape index: {}]   ;;  %s215_s1 = inlined_call_operand.hbm [shape: f32[4,8], index: 1, kind: input, shape index: {}]   ;;  %s216_s2 = inlined_call_operand.hbm [shape: f32[1,8], index: 2, kind: output, shape index: {}]  }
   0x1   :  { %8 = vsyncpa [#allocation3], 0 }
   0x2   :  { %9 = vsyncpa [#allocation4], 0  ;;  %s15_s11 = sshll.u32 %s214_s0, 4  ;;  %s24_s14 = sshll.u32 %s215_s1, 4  ;;  %s16_s11 = int_to_ptr.hbm [resolvable:$true] %s15_s11  ;;  %s25_s14 = int_to_ptr.hbm [resolvable:$true] %s24_s14 }
   0x3   :  { %s184_s15 = smov [#allocation2]   ;;  %s185_s16 = smov [#allocation6]  }
   0x4   :  { %18 = dma.hbm_to_smem %s16_s11, 16, %s184_s15, [#allocation5]  }
   0x5   :  { %s26_s17 = sshll.u32 %s185_s16, 4  ;;  %s27_s17 = int_to_ptr.vmem [resolvable:$true] %s26_s17 }
   0x6   :  { %29 = dma.hbm_to_vmem [thread:$0]  %s25_s14, 64, %s27_s17, [#allocation3]  }
   0x7   :  { %178 = dma.done.wait [#allocation5], 16  }
   0x8   :  { %179 = vsyncadd [#allocation5], 4294967280 }
   0x9   :  { %180 = dma.done.wait [#allocation3], 64  }
   0xa   :  { %181 = vsyncadd [#allocation3], 4294967232 }
   0xb   :  { %38 = sfence }
   0xc   :  { %s40_s18 = sld [smem:[#allocation2]]  ;;  %v39_v0 = vld [vmem:[#allocation6] sm:$0xf]  ;;  %vm64_vm0 = vcmask 57344   ;;  %s186_s1 = smov [#allocation7]  }
   0xd   :  { %s108_s19 = sld [smem:[#allocation2 + $0x1]]  ;;  %s95_s21 = sshll.u32 %s186_s1, 4  ;;  %s96_s21 = int_to_ptr.vmem [resolvable:$true] %s95_s21 }
   0xe   :  { %s109_s0 = sld [smem:[#allocation2 + $0x2]]  ;;  %s97_s24 = sshll.u32 %s216_s2, 4  ;;  %s98_s24 = int_to_ptr.hbm [resolvable:$true] %s97_s24 }
   0xf   :  { %s110_s20 = sld [smem:[#allocation2 + $0x3]] }
  0x12   :  { %v41_v1 = vstv %s40_s18 }
  0x13   :  { %v44_v2 = vstv %s108_s19  ;;  %v42_v3 = vmul.f32 %v41_v1, %v39_v0 }
  0x14   :  { %v45_v4 = vmul.f32 %v44_v2, %v39_v0  ;;  %v51_v5 = vstv %s109_s0 }
  0x15   :  { %v52_v6 = vmul.f32 %v51_v5, %v39_v0  ;;  %v58_v7 = vstv %s110_s20 }
  0x16   :  { %v47_v8 = vrot.slane %v45_v4, 1  ;;  %v59_v9 = vmul.f32 %v58_v7, %v39_v0 }
  0x17   :  { %v54_v10 = vrot.slane %v52_v6, 2 }
  0x18   :  { %v49_v11 = vadd.f32 %v47_v8, %v42_v3  ;;  %v61_v12 = vrot.slane %v59_v9, 3 }
  0x1a   :  { %v56_v13 = vadd.f32 %v54_v10, %v49_v11 }
  0x1c   :  { %v63_v14 = vadd.f32 %v61_v12, %v56_v13 }
  0x1e   :  { %v65_v15 = vsel %vm64_vm0, %v63_v14, -inf }
  0x1f   :  { %66 = vmax.xlane.f32.xlu0 %v65_v15 }
  0x92   :  { %v67_v16 = vpop.xlane.xlu0 %66 }
  0x93   :  { %v68_v17 = vsub.f32 %v63_v14, %v67_v16 }
  0x95   :  { %v69_v18 = vmul.f32 1.442695, %v68_v17 }
  0x97   :  { %114 = vpow2.f32 %v69_v18 }
  0x9d   :  { %v115_v19 = vpop.eup %114 }
  0x9e   :  { %v71_v20 = vsel %vm64_vm0, %v115_v19, 0.0 }
  0x9f   :  { %72 = vadd.xlane.f32.xlu0 %v71_v20 }
 0x112   :  { %v73_v21 = vpop.xlane.xlu0 %72 }
 0x113   :  { %116 = vrcp.f32 %v73_v21  ;;  %v85_v25 = vand.u32 2147483648, %v73_v21  ;;  %v83_v27 = vand.u32 2147483647, %v73_v21  ;;  %vm79_vm2 = vweird.f32 %v73_v21 }
 0x115   :  { %v86_v29 = vor.u32 1.1754944e-38, %v85_v25  ;;  %vm84_vm4 = vcmp.eq.f32.partialorder %v83_v27, 8.507059e+37 }
 0x119   :  { %v117_v22 = vpop.eup %116 }
 0x11a   :  { %v75_v23 = vmul.f32 %v117_v22, %v73_v21  ;;  %vm80_vm1 = vweird.f32 %v117_v22 }
 0x11b   :  { %vm81_vm3 = vmor %vm79_vm2, %vm80_vm1 }
 0x11c   :  { %v76_v24 = vsub.f32 1.0, %v75_v23 }
 0x11e   :  { %v77_v26 = vmul.f32 %v117_v22, %v76_v24 }
 0x120   :  { %v78_v28 = vadd.f32 %v117_v22, %v77_v26 }
 0x122   :  { %v82_v30 = vsel %vm81_vm3, %v117_v22, %v78_v28 }
 0x123   :  { %v87_v31 = vsel %vm84_vm4, %v86_v29, %v82_v30 }
 0x124   :  { %v88_v32 = vmul.f32 %v115_v19, %v87_v31 }
 0x126   :  { %89 = vst.msk [vmem:[#allocation7] sm:$0x1] %vm64_vm0, %v88_v32 }
 0x127   :  { %100 = dma.vmem_to_hbm [thread:$0]  %s96_s21, 16, %s98_s24, [#allocation4]  }
 0x128   :  { %182 = dma.done.wait [#allocation4], 16  }
 0x129   :  { %183 = vsyncadd [#allocation4], 4294967280 }
 0x12a   :  { %105 = vsyncpa [#allocation3], 1 }
 0x12b   :  { %106 = vsyncpa [#allocation4], 1 }
 0x12c   :  { %107 = vsyncpa [#allocation5], 1 }

</bundles_post_ra>
